<compile_context>
chip_gen: v5e
topology: v5e:2x2
jax: 0.10.0
libtpu: 0.0.40
codegen_flags: <defaults>
</compile_context>

<pallas_src>
import functools

import jax
import jax.numpy as jnp
from jax.experimental import pallas as pl
from jax.experimental.pallas import tpu as pltpu


def rotary_tables(dim: int, max_seq_len: int):
    """cos/sin buffers exactly as the PyTorch Rotary.__init__ builds them."""
    n = dim // 4
    angular_freq = (1.0 / 10000.0) ** jnp.linspace(0.0, 1.0, n, dtype=jnp.float32)
    angular_freq = jnp.concatenate([angular_freq, jnp.zeros((n,), jnp.float32)])
    t = jnp.arange(max_seq_len, dtype=jnp.float32)
    theta = jnp.einsum("i,j->ij", t, angular_freq)          # (max_seq_len, dim//2)
    return jnp.cos(theta), jnp.sin(theta)


def rotary_kernel(x_ref, cos_ref, sin_ref, o_ref):
    # x_ref / o_ref : (1, tT, H, D)   -- one (batch, T-tile) block per grid step
    # cos_ref       : (tT, D) = [cos,  cos]    (full width)
    # sin_ref       : (tT, D) = [sin, -sin]    (sign folded into the table)
    x = x_ref[0].astype(jnp.float32)                         # (tT, H, D)
    d = x.shape[-1]
    if d % 128 == 0:
        # Lane-aligned: [x2, x1] via an XLU rotate (off the VALU/store path).
        swapped = pltpu.roll(x, shift=d // 2, axis=2)
    else:
        # Fallback for non-lane-aligned head dims (demo-sized D < 128 etc.).
        half = d // 2
        swapped = jnp.concatenate([x[..., half:], x[..., :half]], axis=-1)
    cos = cos_ref[...][:, None, :]                           # (tT, 1, D) broadcast over H
    sin = sin_ref[...][:, None, :]
    # y[:half] = x1*cos + x2*sin ; y[half:] = x2*cos - x1*sin  (sign in table)
    o_ref[0] = (x * cos + swapped * sin).astype(o_ref.dtype)


def _choose_block_t(T: int, H: int, D: int, itemsize: int) -> int:
    # Per T-row live bytes in one grid step: in + out blocks (double-buffered
    # by the pipeline) + ~3 f32-sized temporaries in the body + table rows.
    per_row = H * D * (4 * itemsize + 3 * 4) + 4 * D * 4
    t = (12 << 20) // max(per_row, 1)          # ~12 MiB live budget per step
    t = max(8, min(t, 1024))
    t -= t % 8                                 # keep (8, 128) tiling happy
    return min(T, max(t, 8))


@functools.partial(jax.jit, static_argnames=("block_t",))
def rotary(x, cos_table, sin_table, *, block_t=None):
    """x: (B, T, H, D) -> same shape, rotary applied per (position, head)."""
    B, T, H, D = x.shape
    assert D % 2 == 0
    half = D // 2
    assert cos_table.shape[0] >= T, "max_seq_len must cover the sequence length"
    assert cos_table.shape[1] == half and sin_table.shape == cos_table.shape

    if block_t is None:
        block_t = _choose_block_t(T, H, D, x.dtype.itemsize)

    # Fold the second-half negation into the sin table and widen both tables to
    # D lanes so the kernel is a pure fused multiply-add (no lane-64 selects).
    cos_full = jnp.concatenate([cos_table[:T], cos_table[:T]], axis=-1)      # (T, D)
    sin_signed = jnp.concatenate([sin_table[:T], -sin_table[:T]], axis=-1)   # (T, D)

    grid = (B, pl.cdiv(T, block_t))
    return pl.pallas_call(
        rotary_kernel,
        out_shape=jax.ShapeDtypeStruct((B, T, H, D), x.dtype),
        grid=grid,
        in_specs=[
            pl.BlockSpec((1, block_t, H, D), lambda b, t: (b, t, 0, 0)),
            pl.BlockSpec((block_t, D), lambda b, t: (t, 0)),
            pl.BlockSpec((block_t, D), lambda b, t: (t, 0)),
        ],
        out_specs=pl.BlockSpec((1, block_t, H, D), lambda b, t: (b, t, 0, 0)),
        compiler_params=pltpu.CompilerParams(
            dimension_semantics=("parallel", "parallel"),
            vmem_limit_bytes=48 << 20,
        ),
    )(x, cos_full, sin_signed)


def rotary_reference(x, cos_table, sin_table):
    """Pure-JAX transcription of the PyTorch forward (for correctness check)."""
    T = x.shape[1]
    half = x.shape[-1] // 2
    c = cos_table[:T][None, :, None, :]
    s = sin_table[:T][None, :, None, :]
    xf = x.astype(jnp.float32)
    x1, x2 = xf[..., :half], xf[..., half:]
    return jnp.concatenate([x1 * c + x2 * s, -x1 * s + x2 * c], axis=-1).astype(x.dtype)


if __name__ == "__main__":
    # (batch, seq, heads, head_dim); D=128 keeps the output lane-dense and the
    # half-swap a native lane rotate, while the total tensor stays tiny.
    B, T, H, D = 2, 8, 4, 128
    MAX_SEQ_LEN = 16

    key = jax.random.PRNGKey(0)
    x = jax.random.normal(key, (B, T, H, D), dtype=jnp.float32)
    cos_table, sin_table = rotary_tables(D, MAX_SEQ_LEN)

    y = rotary(x, cos_table, sin_table)
    jax.block_until_ready(y)

    assert y.shape == (B, T, H, D)
    assert bool(jnp.all(jnp.isfinite(y)))
    y_ref = rotary_reference(x, cos_table, sin_table)
    assert bool(jnp.allclose(y, y_ref, atol=1e-5, rtol=1e-5))
    print("KERNEL_OK")
</pallas_src>

<mosaic_0001>
module attributes {stable_mosaic.version = 11 : i64} {
  func.func @rotary_kernel(%arg0: i32, %arg1: i32, %arg2: memref<1x8x4x128xf32, #tpu.memory_space<vmem>>, %arg3: memref<8x128xf32, #tpu.memory_space<vmem>>, %arg4: memref<8x128xf32, #tpu.memory_space<vmem>>, %arg5: memref<1x8x4x128xf32, #tpu.memory_space<vmem>>) attributes {dimension_semantics = [#tpu.dimension_semantics<parallel>, #tpu.dimension_semantics<parallel>], iteration_bounds = array<i64: 2, 1>, scalar_prefetch = 0 : i64, scratch_operands = 0 : i64, tpu.core_type = #tpu.core_type<tc>, window_params = [{transform_indices = @transform_0, window_bounds = array<i64: 1, 8, 4, 128>}, {transform_indices = @transform_1, window_bounds = array<i64: 8, 128>}, {transform_indices = @transform_2, window_bounds = array<i64: 8, 128>}, {transform_indices = @transform_3, window_bounds = array<i64: 1, 8, 4, 128>}]} {
    %c0 = arith.constant 0 : index
    %c0_0 = arith.constant 0 : index
    %c0_1 = arith.constant 0 : index
    %c0_2 = arith.constant 0 : index
    %0 = vector.load %arg2[%c0, %c0_0, %c0_1, %c0_2] : memref<1x8x4x128xf32, #tpu.memory_space<vmem>>, vector<1x8x4x128xf32>
    %1 = vector.shape_cast %0 : vector<1x8x4x128xf32> to vector<8x4x128xf32>
    %c64_i32 = arith.constant 64 : i32
    %2 = tpu.dynamic_rotate %1 by %c64_i32 dim 2 : vector<8x4x128xf32>, i32 -> vector<8x4x128xf32>
    %c0_3 = arith.constant 0 : index
    %c0_4 = arith.constant 0 : index
    %3 = vector.load %arg3[%c0_3, %c0_4] : memref<8x128xf32, #tpu.memory_space<vmem>>, vector<8x128xf32>
    %4 = vector.shape_cast %3 : vector<8x128xf32> to vector<8x1x128xf32>
    %c0_5 = arith.constant 0 : index
    %c0_6 = arith.constant 0 : index
    %5 = vector.load %arg4[%c0_5, %c0_6] : memref<8x128xf32, #tpu.memory_space<vmem>>, vector<8x128xf32>
    %6 = vector.shape_cast %5 : vector<8x128xf32> to vector<8x1x128xf32>
    %7 = vector.broadcast %4 : vector<8x1x128xf32> to vector<8x4x128xf32>
    %8 = arith.mulf %1, %7 : vector<8x4x128xf32>
    %9 = vector.broadcast %6 : vector<8x1x128xf32> to vector<8x4x128xf32>
    %10 = arith.mulf %2, %9 : vector<8x4x128xf32>
    %11 = arith.addf %8, %10 : vector<8x4x128xf32>
    %c0_7 = arith.constant 0 : index
    %c0_8 = arith.constant 0 : index
    %c0_9 = arith.constant 0 : index
    %c0_10 = arith.constant 0 : index
    %12 = vector.load %arg5[%c0_7, %c0_8, %c0_9, %c0_10] : memref<1x8x4x128xf32, #tpu.memory_space<vmem>>, vector<1x8x4x128xf32>
    %13 = vector.shape_cast %12 : vector<1x8x4x128xf32> to vector<8x4x128xf32>
    %14 = vector.shape_cast %11 : vector<8x4x128xf32> to vector<1x8x4x128xf32>
    tpu.vector_store %arg5[%c0_7, %c0_8, %c0_9, %c0_10], %14 {strides = array<i32>} : memref<1x8x4x128xf32, #tpu.memory_space<vmem>>, vector<1x8x4x128xf32>,
    return
  }
  func.func @transform_0(%arg0: i32, %arg1: i32) -> (i32, i32, i32, i32) {
    %c0_i32 = arith.constant 0 : i32
    %c0_i32_0 = arith.constant 0 : i32
    %c0_i32_1 = arith.constant 0 : i32
    return %arg0, %arg1, %c0_i32, %c0_i32_0 : i32, i32, i32, i32
  }
  func.func @transform_1(%arg0: i32, %arg1: i32) -> (i32, i32) {
    %c0_i32 = arith.constant 0 : i32
    %c0_i32_0 = arith.constant 0 : i32
    return %arg1, %c0_i32 : i32, i32
  }
  func.func @transform_2(%arg0: i32, %arg1: i32) -> (i32, i32) {
    %c0_i32 = arith.constant 0 : i32
    %c0_i32_0 = arith.constant 0 : i32
    return %arg1, %c0_i32 : i32, i32
  }
  func.func @transform_3(%arg0: i32, %arg1: i32) -> (i32, i32, i32, i32) {
    %c0_i32 = arith.constant 0 : i32
    %c0_i32_0 = arith.constant 0 : i32
    %c0_i32_1 = arith.constant 0 : i32
    return %arg0, %arg1, %c0_i32, %c0_i32_0 : i32, i32, i32, i32
  }
}

</mosaic_0001>

<bundles_post_ra>
// kernel: rotary.1
= control target key start
LH: loop header
LB: loop body
LE: loop exit
PB: predicated region body
PF: predicated region fallthrough
CT: control target
= control target key end

     0   :  { %8 = vsyncpa [#allocation3], 0  ;;  %s868_s0 = inlined_call_operand.hbm [shape: f32[2,8,4,128], index: 0, kind: input, shape index: {}]   ;;  %s869_s1 = inlined_call_operand.vmem [shape: f32[8,128], index: 1, kind: input, shape index: {}]   ;;  %s870_s2 = inlined_call_operand.vmem [shape: f32[8,128], index: 2, kind: input, shape index: {}]   ;;  %s871_s3 = inlined_call_operand.hbm [shape: f32[2,8,4,128], index: 3, kind: output, shape index: {}]  }
   0x1   :  { %10 = vsyncpa [#allocation3 + $0x1], 0 }
   0x2   :  { %11 = vsyncpa [#allocation4], 0 }
   0x3   :  { %13 = vsyncpa [#allocation4 + $0x1], 0  ;;  %s709_s12 = smov 0   ;;  %s711_s13 = smov 0  }
   0x4   :  { %s713_s14 = smov 0   ;;  %s715_s15 = smov 0  }
   0x5   :  { %s717_s16 = smov 0   ;;  %s719_s17 = smov 0  }
   0x6 LB: > { %s486_s18 = sadd.s32 4294967295, %s683_s17   ;;  %s487_s19 = sadd.s32 4294967294, %s683_s17   ;;  %s683_s17 = sphi %s719_s17, %s19_s17   ;;  %s679_s16 = sphi %s717_s16, %s880_s16   ;;  %s675_s15 = sphi %s715_s15, %s879_s15   ;;  %s671_s14 = sphi %s713_s14, %s878_s14   ;;  %s667_s13 = sphi %s711_s13, %s877_s13   ;;  %s663_s12 = sphi %s709_s12, %s876_s12  }
   0x7   : > { %s31_s20 = sadd.s32 1, %s679_s16  ;;  %s40_s21 = sadd.s32 1, %s671_s14 }
   0x8   : > { %p33_p0 = scmp.ge.s32.totalorder %s31_s20, 2  ;;  %p47_p1 = scmp.ne.s32.totalorder %s671_s14, %s667_s13 }
   0x9   : > { %p48_p2 = scmp.eq.s32.totalorder %s683_s17, 0  ;;  %p53_p3 = scmp.ne.s32.totalorder %s667_s13, %s663_s12 }
   0xa   : > { %s882_s20 = smov (%p33_p0, %s31_s20), 0  ;;  %p54_p5 = scmp.eq.s32.totalorder %s486_s18, 0 }
   0xb   : > { %p750_p4 = por %p48_p2, %p47_p1  ;;  %s35_s23 = ssub.s32 %s679_s16, %s882_s20 }
   0xc   : > { %p131_p6 = scmp.eq.s32.totalorder %s486_s18, 1  ;;  %p38_p7 = scmp.eq.s32.totalorder %s35_s23, 0 }
   0xd   : > { %p756_p8 = por %p54_p5, %p53_p3  ;;  %p137_p10 = scmp.eq.s32.totalorder %s487_s19, 1 }
   0xe   : > { %p760_p9 = por %p131_p6, %p47_p1  ;;  %p491_p12 = scmp.ge.s32.totalorder %s683_s17, 2 }
   0xf   : > { %s765_s26 = scalar_select %p38_p7, %s671_s14, %s40_s21  }
  0x10   : > { %p767_p11 = por %p137_p10, %p53_p3  ;;  %p517_p13 = scmp.lt.s32.totalorder %s683_s17, 2 }
  0x11   : > { %s171_s28 = sand.u32 1, %s671_s14   ;;  %s503_s30 = sshll.u32 %s679_s16, 5 }
  0x12   : > { %s492_s29 = sshll.u32 %s171_s28, 5  ;;  %s182_s6 = scalar_lea.hbm %s868_s0, %s503_s30 }
  0x13   : > { %s175_s7 = scalar_lea.vmem [#allocation2], %s492_s29  ;;  %s183_s9 = sshll.u32 %s182_s6, 4  ;;  %s184_s9 = int_to_ptr.hbm [resolvable:$true] %s183_s9 }
  0x14   : > { %s185_s8 = sshll.u32 %s175_s7, 4  ;;  %p510_p0 = pnand %p517_p13, %p750_p4  ;;  %s186_s8 = int_to_ptr.vmem [resolvable:$true] %s185_s8 }
  0x15   : > { %p495_p1 = scmp.ge.s32.totalorder %s683_s17, 1  ;;  %s172_s10 = scalar_lea.sflag [#allocation3], %s171_s28 }
  0x16   : > { %s685_s11 = smov 64   ;;  %s686_s18 = smov 4  }
  0x17   : > { %512 = dma.hbm_to_vmem [thread:$0]  (!%p510_p0), %s184_s9, 512, %s186_s8, %s172_s10, %s685_s11, %s685_s11, %s686_s18  }
  0x18   : > { %p193_p2 = scmp.lt.s32.totalorder %s683_s17, 3 }
  0x1a   : > { %p194_p3 = pnand %p495_p1, %p193_p2 }
  0x1b   : > { %s783_s19 = sand.u32 (!%p194_p3), 1, %s667_s13  }
  0x1c   : > { %197 = sbr.rel (%p194_p3) target bundleno = 175 (0xaf), region = 32  ;;  %s496_s21 = sshll.u32 (!%p194_p3), %s783_s19, 5 }
  0x1d   : > { %s200_s23 = scalar_lea.sflag (!%p194_p3), [#allocation3], %s783_s19  ;;  %s203_s22 = scalar_lea.vmem (!%p194_p3), [#allocation2], %s496_s21 }
  0x21   : > { %654 = dma.done.wait (%p756_p8), %s200_s23, 512  }
  0x22   : > { %656 = vsyncadd (%p756_p8), %s200_s23, 4294966784  ;;  %v247_v0 = vld [vmem:[%s203_s22 + $0x8] sm:$0xf]  ;;  %v245_v1 = vld [vmem:[%s203_s22] sm:$0xf]  ;;  %s687_s28 = smov 64  }
  0x23   : > { %257 = vrot.lane.b32.xlu1 %v247_v0, %s687_s28  ;;  %253 = vrot.lane.b32.xlu0 %v245_v1, %s687_s28  ;;  %v249_v2 = vld [vmem:[%s203_s22 + $0x10] sm:$0xf]  ;;  %v248_v3 = vld [vmem:[%s203_s22 + $0xc] sm:$0xf]  ;;  %s815_s5 = scalar_lea.vmem [#allocation5], %s496_s21  ;;  %s504_s6 = sshll.u32 %s675_s15, 5 }
  0x24   : > { %261 = vrot.lane.b32.xlu2 %v249_v2, %s687_s28  ;;  %v246_v4 = vld [vmem:[%s203_s22 + $0x4] sm:$0xf]  ;;  %v250_v5 = vld [vmem:[%s203_s22 + $0x14] sm:$0xf]  ;;  %v799_v6 = vld [vmem:[%s203_s22 + $0x1c] sm:$0xf]  ;;  %s365_s9 = scalar_lea.hbm %s871_s3, %s504_s6 }
  0x25   : > { %v801_v7 = vld [vmem:[%s203_s22 + $0x18] sm:$0xf]  ;;  %v269_v8 = vld [vmem:[%s869_s1] sm:$0xff]  ;;  %s366_s10 = sshll.u32 %s815_s5, 4  ;;  %s368_s15 = sshll.u32 %s365_s9, 4  ;;  %s367_s10 = int_to_ptr.vmem [resolvable:$true] %s366_s10  ;;  %s369_s15 = int_to_ptr.hbm [resolvable:$true] %s368_s15 }
  0x26   : > { %v274_v9 = vrot.slane %v269_v8, 4  ;;  %v278_v10 = vld [vmem:[%s870_s2] sm:$0xff]  ;;  %v275_v15 = vrot.slane %v269_v8, 5  ;;  %v272_v25 = vrot.slane %v269_v8, 2  ;;  %v287_v29 = vperm.slane %v269_v8, 0  ;;  %s352_s11 = scalar_lea.sflag [#allocation4], %s783_s19 }
  0x27   : > { %v283_v11 = vrot.slane %v278_v10, 4  ;;  %v284_v18 = vrot.slane %v278_v10, 5  ;;  %v281_v27 = vrot.slane %v278_v10, 2  ;;  %v311_v31 = vperm.slane %v278_v10, 0  ;;  %s615_s18 = sshra.s32 %s369_s15, 4  ;;  %s621_s24 = scalar_lea.hbm %s871_s3, 64  ;;  %s616_s18 = int_to_ptr.hbm [resolvable:$true] %s615_s18 }
  0x28   : > { %v291_v12 = vperm.slane %v274_v9, 0  ;;  %v292_v19 = vperm.slane %v275_v15, 0  ;;  %v289_v28 = vperm.slane %v272_v25, 0  ;;  %v303_v33 = vmul.f32 %v287_v29, %v245_v1  ;;  %s617_s21 = scalar_lea.hbm %s616_s18, 32  ;;  %p622_p7 = scmp.lt.s32.totalorder %s616_s18, %s871_s3 }
  0x29   : > { %v315_v13 = vperm.slane %v283_v11, 0  ;;  %v316_v21 = vperm.slane %v284_v18, 0  ;;  %v313_v30 = vperm.slane %v281_v27, 0  ;;  %v273_v34 = vrot.slane %v269_v8, 3  ;;  %p618_p4 = scmp.ne.s32.totalorder %s616_s18, %s617_s21  ;;  %p623_p8 = scmp.lt.s32.totalorder %s621_s24, %s617_s21 }
  0x2a   : > { %v307_v14 = vmul.f32 %v291_v12, %v249_v2  ;;  %v308_v22 = vmul.f32 %v292_v19, %v250_v5  ;;  %v305_v32 = vmul.f32 %v289_v28, %v247_v0  ;;  %v271_v35 = vrot.slane %v269_v8, 1 }
  0x2b   : > { %259 = vrot.lane.b32.xlu1 %v248_v3, %s687_s28  ;;  %255 = vrot.lane.b32.xlu0 %v246_v4, %s687_s28  ;;  %v282_v40 = vrot.slane %v278_v10, 3  ;;  %v280_v41 = vrot.slane %v278_v10, 1  ;;  %v290_v42 = vperm.slane %v273_v34, 0  ;;  %v277_v50 = vrot.slane %v269_v8, 7  ;;  %p619_p5 = pnand %p618_p4, %p760_p9  ;;  %p624_p10 = por %p623_p8, %p622_p7 }
  0x2c   : > { %263 = vrot.lane.b32.xlu2 %v250_v5, %s687_s28  ;;  %v288_v43 = vperm.slane %v271_v35, 0  ;;  %v276_v51 = vrot.slane %v269_v8, 6  ;;  %v286_v56 = vrot.slane %v278_v10, 7  ;;  %v285_v57 = vrot.slane %v278_v10, 6 }
  0x2d   : > { %v314_v46 = vperm.slane %v282_v40, 0  ;;  %v312_v47 = vperm.slane %v280_v41, 0  ;;  %v306_v48 = vmul.f32 %v290_v42, %v248_v3  ;;  %v294_v58 = vperm.slane %v277_v50, 0  ;;  %p620_p6 = pneg %p619_p5 }
  0x2e   : > { %v304_v49 = vmul.f32 %v288_v43, %v246_v4  ;;  %v293_v59 = vperm.slane %v276_v51, 0  ;;  %v318_v62 = vperm.slane %v286_v56, 0  ;;  %v317_v63 = vperm.slane %v285_v57, 0 }
  0x2f   : > { %v310_v0 = vmul.f32 %v294_v58, %v799_v6  ;;  %p625_p13 = pnand %p624_p10, %p620_p6 }
  0x30   : > { %v309_v1 = vmul.f32 %v293_v59, %v801_v7 }
  0x33   : > { %267 = vrot.lane.b32.xlu1 %v799_v6, %s687_s28  ;;  %265 = vrot.lane.b32.xlu0 %v801_v7, %s687_s28 }
  0x7e   : > { %v262_v16 = vpop.permute.xlu2 %261 }
  0x7f   : > { %v331_v17 = vmul.f32 %v315_v13, %v262_v16 }
  0x81   : > { %v339_v20 = vadd.f32 %v331_v17, %v307_v14 }
  0x83   : > { %347 = vst [vmem:[%s815_s5 + $0x10] sm:$0xf] %v339_v20 }
  0x86   : > { %v264_v23 = vpop.permute.xlu2 %263 }
  0x87   : > { %v332_v24 = vmul.f32 %v316_v21, %v264_v23 }
  0x89   : > { %v340_v26 = vadd.f32 %v332_v24, %v308_v22 }
  0x8b   : > { %348 = vst [vmem:[%s815_s5 + $0x14] sm:$0xf] %v340_v26 }
  0x95   : > { %v258_v36 = vpop.permute.xlu1 %257  ;;  %v254_v37 = vpop.permute.xlu0 %253 }
  0x96   : > { %v329_v38 = vmul.f32 %v313_v30, %v258_v36  ;;  %v327_v39 = vmul.f32 %v311_v31, %v254_v37 }
  0x98   : > { %v337_v44 = vadd.f32 %v329_v38, %v305_v32  ;;  %v335_v45 = vadd.f32 %v327_v39, %v303_v33 }
  0x9a   : > { %345 = vst [vmem:[%s815_s5 + $0x8] sm:$0xf] %v337_v44 }
  0x9b   : > { %343 = vst [vmem:[%s815_s5] sm:$0xf] %v335_v45 }
  0x9d   : > { %v260_v52 = vpop.permute.xlu1 %259  ;;  %v256_v53 = vpop.permute.xlu0 %255 }
  0x9e   : > { %v330_v54 = vmul.f32 %v314_v46, %v260_v52  ;;  %v328_v55 = vmul.f32 %v312_v47, %v256_v53 }
  0xa0   : > { %v338_v60 = vadd.f32 %v330_v54, %v306_v48  ;;  %v336_v61 = vadd.f32 %v328_v55, %v304_v49 }
  0xa2   : > { %346 = vst [vmem:[%s815_s5 + $0xc] sm:$0xf] %v338_v60 }
  0xa3   : > { %344 = vst [vmem:[%s815_s5 + $0x4] sm:$0xf] %v336_v61 }
  0xa5   : > { %v268_v2 = vpop.permute.xlu1 %267  ;;  %v266_v3 = vpop.permute.xlu0 %265 }
  0xa6   : > { %v334_v4 = vmul.f32 %v318_v62, %v268_v2  ;;  %v333_v5 = vmul.f32 %v317_v63, %v266_v3 }
  0xa8   : > { %v342_v8 = vadd.f32 %v334_v4, %v310_v0  ;;  %v341_v9 = vadd.f32 %v333_v5, %v309_v1 }
  0xaa   : > { %350 = vst [vmem:[%s815_s5 + $0x1c] sm:$0xf] %v342_v8 }
  0xab   : > { %349 = vst [vmem:[%s815_s5 + $0x18] sm:$0xf] %v341_v9 }
  0xac   : > { %628 = shalt.err (!%p625_p13)
}
  0xad   : > { %s688_s19 = smov 4  }
  0xae   : > { %507 = dma.vmem_to_hbm [thread:$0]  (%p760_p9), %s367_s10, 512, %s369_s15, %s352_s11, %s687_s28, %s687_s28, %s688_s19  }
  0xaf PF: > { %s383_s4 = sand.u32 1, %s663_s12   ;;  %p514_p0 = pnand %p491_p12, %p767_p11 }
  0xb0   : > { %s384_s5 = scalar_lea.sflag [#allocation4], %s383_s4 }
  0xb1   : > { %p515_p1 = pneg %p514_p0 }
  0xb3   : > { %658 = dma.done.wait (%p515_p1), %s384_s5, 512  }
  0xb4   : > { %660 = vsyncadd (%p515_p1), %s384_s5, 4294966784  ;;  %s19_s17 = sadd.s32 1, %s683_s17   ;;  %s876_s12 = smov %s667_s13 }
  0xb5   : > { %p16_p2 = scmp.ge.s32.totalorder %s19_s17, 4   ;;  %s877_s13 = smov %s671_s14 }
  0xb6   : > { %s878_s14 = smov %s765_s26  ;;  %s879_s15 = smov %s679_s16 }
  0xb7   : > { %s880_s16 = smov %s882_s20  ;;  %18 = sbr.rel (!%p16_p2) target bundleno = 6 (0x6), region = 83 }
  0xbc   :  { %390 = vsyncpa [#allocation3], 1 }
  0xbd   :  { %392 = vsyncpa [#allocation3 + $0x1], 1 }
  0xbe   :  { %393 = vsyncpa [#allocation4], 1 }
  0xbf   :  { %395 = vsyncpa [#allocation4 + $0x1], 1 }

</bundles_post_ra>
